<compile_context>
chip_gen: v7x
topology: tpu7x:2x2x1
jax: 0.10.0
libtpu: 0.0.40
codegen_flags: <defaults>
</compile_context>

<pallas_src>
import functools
import math

import jax
import jax.numpy as jnp
from jax import lax
from jax.experimental import pallas as pl
from jax.experimental.pallas import tpu as pltpu

PI = 3.141592653589793
NEG = -1e30  # "minus infinity" that stays NaN-free through exp/max


def _round_up(n, k):
  return ((n + k - 1) // k) * k


def _acos(x):
  """acos for x in [-1, 1] from VPU-only ops (sqrt + minimax polynomial).

  Abramowitz & Stegun 4.4.46, |err| <= 2e-8 (float32 resolution); avoids
  relying on a Mosaic lowering for lax.acos_p.
  """
  ax = jnp.abs(x)
  p = jnp.float32(-0.0012624911)
  for c in (0.0066700901, -0.0170881256, 0.0308918810, -0.0501743046,
            0.0889789874, -0.2145988016, 1.5707963050):
    p = p * ax + jnp.float32(c)
  r = p * jnp.sqrt(jnp.maximum(1.0 - ax, 0.0))
  return jnp.where(x < 0.0, PI - r, r)


# ----------------------------------------------------------------------------
# Planning: per-generation tile / VMEM sizing (done once, outside the hot path).
# ----------------------------------------------------------------------------
def plan_asoftmax(B, D, C, mxu_dtype=jnp.bfloat16, scores_dtype=jnp.float32):
  mxu_b = jnp.dtype(mxu_dtype).itemsize
  out_b = jnp.dtype(scores_dtype).itemsize
  try:
    vmem_cap = int(pltpu.get_tpu_info().vmem_capacity_bytes)
  except Exception:
    vmem_cap = 64 << 20                      # conservative (v7x-sized) fallback
  # Heuristic: 64 MiB VMEM => v7x-class chip (2 TensorCores); 128 MiB => v5e/v6e (1 TC).
  num_tc = 2 if vmem_cap <= (96 << 20) else 1
  vmem_limit = min((vmem_cap * 4) // 5, 100 << 20)
  budget = vmem_limit - (16 << 20)           # double-buffered tiles + f32 temps

  D_pad = _round_up(D, 128)
  B8 = _round_up(max(B, 1), 8)
  # Whole batch resident per core (nbt == num_tc) so W^T is not re-streamed.
  tb_want = _round_up(-(-B8 // num_tc), 8)

  # Large lane-dense class tiles amortize the ~0.35us per-grid-step overhead.
  TC = min(1024, _round_up(C, 128))
  while True:
    fixed = 2 * D_pad * TC * mxu_b + 4 * D_pad * TC        # wt dbl-buffer + f32 norm temp
    per_row = 2 * D_pad * mxu_b + 2 * TC * out_b + 16 * TC  # x + scores dbl-buffers + f32 temps
    tb_cap = max(8, (max(budget - fixed, 0) // per_row) // 8 * 8)
    if TC == 128 or tb_cap >= min(tb_want, 256):
      break
    TC //= 2

  TB = max(8, min(tb_want, tb_cap))
  nbt = -(-B8 // TB)
  TB = _round_up(-(-B8 // nbt), 8)           # shrink TB to minimize batch padding
  C_pad = _round_up(C, TC)
  return dict(B=B, D=D, C=C, TB=TB, TC=TC, D_pad=D_pad, C_pad=C_pad,
              B_pad=TB * nbt, mxu_dtype=mxu_dtype, scores_dtype=scores_dtype,
              vmem_limit=vmem_limit)


def prepare_asoftmax_weight(plan, weight):
  """Transpose + pad + cast the [C, D] weight once (hoisted out of the hot path)."""
  C, D = weight.shape
  assert (C, D) == (plan["C"], plan["D"])
  wt = weight.T.astype(plan["mxu_dtype"])                  # [D, C]
  if (D, C) != (plan["D_pad"], plan["C_pad"]):
    wt = jnp.zeros((plan["D_pad"], plan["C_pad"]), plan["mxu_dtype"]).at[:D, :C].set(wt)
  return wt


# ----------------------------------------------------------------------------
# Kernel.
# ----------------------------------------------------------------------------
def _asoftmax_kernel(x_ref, wt_ref, tgt_ref,
                     scores_ref, loss_ref, match_ref,
                     xlen_sc, m_sc, l_sc, tlogit_sc, bval_sc, bidx_sc,
                     *, m, lam, b_actual, c_actual, mask_classes):
  i = pl.program_id(0)          # batch tile (parallel)
  j = pl.program_id(1)          # class tile (arbitrary / reduction)
  nct = pl.num_programs(1)
  tb, tc = scores_ref.shape

  x = x_ref[...]                # (TB, D_pad)  bf16 straight to the MXU
  wt = wt_ref[...]              # (D_pad, TC)  bf16
  tgt = tgt_ref[...]            # (TB, 1) int32

  @pl.when(j == 0)
  def _init():
    xf = x.astype(jnp.float32)
    xlen_sc[...] = jnp.sqrt(jnp.sum(xf * xf, axis=1, keepdims=True))
    m_sc[...] = jnp.full_like(m_sc, NEG)
    l_sc[...] = jnp.zeros_like(l_sc)
    tlogit_sc[...] = jnp.zeros_like(tlogit_sc)
    bval_sc[...] = jnp.full_like(bval_sc, NEG)
    bidx_sc[...] = jnp.zeros_like(bidx_sc)

  # Per-class 1/||w_c|| from the W^T tile already in VMEM (folded weight-norm pass).
  wf = wt.astype(jnp.float32)
  w_nrm = jnp.sqrt(jnp.sum(wf * wf, axis=0, keepdims=True))          # (1, TC)
  inv_wn = 1.0 / jnp.maximum(w_nrm, 1e-12)                           # F.normalize eps

  # MXU: [TB, D] x [D, TC] bf16 -> f32 accumulate; weight norm folded in as a column scale.
  raw = lax.dot_general(x, wt, (((1,), (0,)), ((), ())),
                        preferred_element_type=jnp.float32)
  sc = raw * inv_wn                                                  # (TB, TC) f32

  # scores = F.linear(x, normalize(W)) (pre-margin) — streamed out per tile, lane-dense.
  scores_ref[...] = sc.astype(scores_ref.dtype)

  col = lax.broadcasted_iota(jnp.int32, (tb, tc), 1) + j * tc
  index = (col == tgt).astype(jnp.float32)                           # one-hot(target)
  has_t = jnp.sum(index, axis=1, keepdims=True)                      # target in this tile?

  # ---- margin transform on the TARGET column only: O(TB) work ----
  x_len = xlen_sc[...]
  tsc = jnp.sum(sc * index, axis=1, keepdims=True)                   # target score
  cos_t = jnp.clip(tsc / jnp.maximum(x_len, 1e-12), -1.0, 1.0)       # exact divide
  m_theta = m * _acos(cos_t)
  k = jnp.floor(m_theta * (1.0 / PI))
  parity = k - 2.0 * jnp.floor(k * 0.5)
  sign = 1.0 - 2.0 * parity                                          # (-1) ** k
  psi = (sign * jnp.cos(m_theta) - 2.0 * k) * x_len
  inv = jnp.float32(1.0 / (1.0 + lam))
  tgt_new = tsc * (1.0 - inv) + psi * inv                            # mixed target logit
  sc_new = sc + (tgt_new - tsc) * index                              # only target col changes

  if mask_classes:   # trace-time gate: only emitted when C % TC != 0
    cmask = (lax.broadcasted_iota(jnp.int32, (1, tc), 1) + j * tc) < c_actual
    sc_new = sc_new + jnp.where(cmask, 0.0, NEG)                     # (1,TC) column bias add

  # ---- online log-sum-exp over class tiles ----
  m_old = m_sc[...]
  tile_max = jnp.max(sc_new, axis=1, keepdims=True)
  m_new = jnp.maximum(m_old, tile_max)
  alpha = jnp.exp(m_old - m_new)
  l_sc[...] = alpha * l_sc[...] + jnp.sum(jnp.exp(sc_new - m_new), axis=1, keepdims=True)
  m_sc[...] = m_new
  tlogit_sc[...] = tlogit_sc[...] + tgt_new * has_t

  # ---- running first-occurrence argmax over sc_new (torch.max tie-breaking), int32 ----
  cand = jnp.where(sc_new == tile_max, col, jnp.int32(2 ** 30))
  tile_arg = jnp.min(cand, axis=1, keepdims=True)                    # int32 (TB, 1)
  take = tile_max > bval_sc[...]
  bidx_sc[...] = jnp.where(take, tile_arg, bidx_sc[...])
  bval_sc[...] = jnp.where(take, tile_max, bval_sc[...])

  @pl.when(j == nct - 1)
  def _finalize():
    row = lax.broadcasted_iota(jnp.int32, (tb, 1), 0) + i * tb
    vrow = (row < b_actual).astype(jnp.float32)                      # mask padded rows
    lse = jnp.log(l_sc[...]) + m_sc[...]
    loss_ref[...] = ((lse - tlogit_sc[...]) * vrow).astype(loss_ref.dtype)
    match = (bidx_sc[...] == tgt).astype(jnp.float32) * vrow
    match_ref[...] = match.astype(match_ref.dtype)


# ----------------------------------------------------------------------------
# Wrapper.
# ----------------------------------------------------------------------------
def asoftmax_forward(plan, x, wt_prepared, target, *, m=2.0, Lambda=1500.0):
  """Returns (scores, ce_loss, correct) matching asoftmax.forward.

  `wt_prepared` must come from prepare_asoftmax_weight(plan, weight).
  """
  B, D = x.shape
  assert (B, D) == (plan["B"], plan["D"])
  C = plan["C"]
  TB, TC = plan["TB"], plan["TC"]
  D_pad, C_pad, B_pad = plan["D_pad"], plan["C_pad"], plan["B_pad"]
  nbt, nct = B_pad // TB, C_pad // TC

  xp = x.astype(plan["mxu_dtype"])
  if (B, D) != (B_pad, D_pad):
    xp = jnp.zeros((B_pad, D_pad), plan["mxu_dtype"]).at[:B, :D].set(xp)
  tgtp = target.astype(jnp.int32).reshape(B, 1)
  if B != B_pad:
    tgtp = jnp.zeros((B_pad, 1), jnp.int32).at[:B, :].set(tgtp)

  kernel = functools.partial(_asoftmax_kernel, m=float(m), lam=float(Lambda),
                             b_actual=B, c_actual=C,
                             mask_classes=(C != C_pad))

  scores_p, loss_rows, match_rows = pl.pallas_call(
      kernel,
      out_shape=(
          jax.ShapeDtypeStruct((B_pad, C_pad), plan["scores_dtype"]),
          jax.ShapeDtypeStruct((B_pad, 1), jnp.float32),
          jax.ShapeDtypeStruct((B_pad, 1), jnp.float32),
      ),
      grid_spec=pltpu.PrefetchScalarGridSpec(
          num_scalar_prefetch=0,
          grid=(nbt, nct),
          in_specs=[
              pl.BlockSpec((TB, D_pad), lambda i, j: (i, 0)),   # x (bf16)
              pl.BlockSpec((D_pad, TC), lambda i, j: (0, j)),   # W^T tile (bf16)
              pl.BlockSpec((TB, 1), lambda i, j: (i, 0)),       # target
          ],
          out_specs=(
              pl.BlockSpec((TB, TC), lambda i, j: (i, j)),      # scores
              pl.BlockSpec((TB, 1), lambda i, j: (i, 0)),       # per-row loss
              pl.BlockSpec((TB, 1), lambda i, j: (i, 0)),       # per-row match
          ),
          scratch_shapes=[
              pltpu.VMEM((TB, 1), jnp.float32),   # ||x||
              pltpu.VMEM((TB, 1), jnp.float32),   # running max
              pltpu.VMEM((TB, 1), jnp.float32),   # running sum-exp
              pltpu.VMEM((TB, 1), jnp.float32),   # target logit
              pltpu.VMEM((TB, 1), jnp.float32),   # running argmax value
              pltpu.VMEM((TB, 1), jnp.int32),     # running argmax index (exact)
          ],
      ),
      compiler_params=pltpu.CompilerParams(
          dimension_semantics=("parallel", "arbitrary"),
          vmem_limit_bytes=plan["vmem_limit"],
      ),
  )(xp, wt_prepared, tgtp)

  scores = scores_p[:B, :C]
  loss = jnp.sum(loss_rows) / B                    # global-B mean (CrossEntropyLoss)
  correct = jnp.sum(match_rows).astype(jnp.int32)
  return scores, loss, correct


if __name__ == "__main__":
  # Module hyper-params: feature_dim, class_num, m >= 1, use_w_norm=True.
  B, FEATURE_DIM, CLASS_NUM = 8, 64, 32
  M = 2.0
  it = 0
  Lambda = max(5.0, 1500.0 / (1 + 0.1 * it))   # self.Lambda at first call (stateful schedule lives in the wrapper)

  key = jax.random.PRNGKey(0)
  kx, kw, kt = jax.random.split(key, 3)

  x = jax.random.normal(kx, (B, FEATURE_DIM), jnp.float32)
  # kaiming_uniform_(a=sqrt(5)) on (out_features, in_features)
  #   -> Uniform(-1/sqrt(fan_in), 1/sqrt(fan_in)), fan_in = feature_dim
  bound = 1.0 / math.sqrt(FEATURE_DIM)
  weight = jax.random.uniform(kw, (CLASS_NUM, FEATURE_DIM), jnp.float32,
                              minval=-bound, maxval=bound)
  target = jax.random.randint(kt, (B, 1), 0, CLASS_NUM, jnp.int32)

  plan = plan_asoftmax(B, FEATURE_DIM, CLASS_NUM)
  wt = prepare_asoftmax_weight(plan, weight)   # hoisted: do once per weight update
  scores, loss, correct = asoftmax_forward(plan, x, wt, target, m=M, Lambda=Lambda)
  jax.block_until_ready((scores, loss, correct))
  print("KERNEL_OK")
</pallas_src>

<mosaic_0001>
module attributes {stable_mosaic.version = 11 : i64} {
  func.func @_asoftmax_kernel(%arg0: i32, %arg1: i32, %arg2: memref<8x128xbf16, #tpu.memory_space<vmem>>, %arg3: memref<128x128xbf16, #tpu.memory_space<vmem>>, %arg4: memref<8x1xi32, #tpu.memory_space<vmem>>, %arg5: memref<8x128xf32, #tpu.memory_space<vmem>>, %arg6: memref<8x1xf32, #tpu.memory_space<vmem>>, %arg7: memref<8x1xf32, #tpu.memory_space<vmem>>, %arg8: memref<8x1xf32, #tpu.memory_space<vmem>>, %arg9: memref<8x1xf32, #tpu.memory_space<vmem>>, %arg10: memref<8x1xf32, #tpu.memory_space<vmem>>, %arg11: memref<8x1xf32, #tpu.memory_space<vmem>>, %arg12: memref<8x1xf32, #tpu.memory_space<vmem>>, %arg13: memref<8x1xi32, #tpu.memory_space<vmem>>) attributes {dimension_semantics = [#tpu.dimension_semantics<parallel>, #tpu.dimension_semantics<arbitrary>], iteration_bounds = array<i64: 1, 1>, scalar_prefetch = 0 : i64, scratch_operands = 6 : i64, tpu.core_type = #tpu.core_type<tc>, window_params = [{transform_indices = @transform_0, window_bounds = array<i64: 8, 128>}, {transform_indices = @transform_1, window_bounds = array<i64: 128, 128>}, {transform_indices = @transform_2, window_bounds = array<i64: 8, 1>}, {transform_indices = @transform_3, window_bounds = array<i64: 8, 128>}, {transform_indices = @transform_4, window_bounds = array<i64: 8, 1>}, {transform_indices = @transform_5, window_bounds = array<i64: 8, 1>}]} {
    %c0 = arith.constant 0 : index
    %c0_0 = arith.constant 0 : index
    %0 = vector.load %arg2[%c0, %c0_0] : memref<8x128xbf16, #tpu.memory_space<vmem>>, vector<8x128xbf16>
    %c0_1 = arith.constant 0 : index
    %c0_2 = arith.constant 0 : index
    %1 = vector.load %arg3[%c0_1, %c0_2] : memref<128x128xbf16, #tpu.memory_space<vmem>>, vector<128x128xbf16>
    %c0_3 = arith.constant 0 : index
    %c0_4 = arith.constant 0 : index
    %2 = vector.load %arg4[%c0_3, %c0_4] : memref<8x1xi32, #tpu.memory_space<vmem>>, vector<8x1xi32>
    %c0_i32 = arith.constant 0 : i32
    %3 = arith.cmpi eq, %arg1, %c0_i32 : i32
    %4 = arith.extui %3 : i1 to i32
    %c0_i32_5 = arith.constant 0 : i32
    %5 = arith.cmpi ne, %4, %c0_i32_5 : i32
    scf.if %5 {
      %153 = arith.extf %0 : vector<8x128xbf16> to vector<8x128xf32>
      %154 = arith.mulf %153, %153 : vector<8x128xf32>
      %cst_70 = arith.constant dense<0.000000e+00> : vector<8xf32>
      %155 = vector.multi_reduction <add>, %154, %cst_70 [1] : vector<8x128xf32> to vector<8xf32>
      %156 = vector.shape_cast %155 : vector<8xf32> to vector<8x1xf32>
      %157 = math.sqrt %156 : vector<8x1xf32>
      %c0_71 = arith.constant 0 : index
      %c0_72 = arith.constant 0 : index
      %158 = vector.load %arg8[%c0_71, %c0_72] : memref<8x1xf32, #tpu.memory_space<vmem>>, vector<8x1xf32>
      tpu.vector_store %arg8[%c0_71, %c0_72], %157 {strides = array<i32>} : memref<8x1xf32, #tpu.memory_space<vmem>>, vector<8x1xf32>,
      %cst_73 = arith.constant -1.000000e+30 : f32
      %159 = vector.broadcast %cst_73 : f32 to vector<8x1xf32>
      %c0_74 = arith.constant 0 : index
      %c0_75 = arith.constant 0 : index
      %160 = vector.load %arg9[%c0_74, %c0_75] : memref<8x1xf32, #tpu.memory_space<vmem>>, vector<8x1xf32>
      tpu.vector_store %arg9[%c0_74, %c0_75], %159 {strides = array<i32>} : memref<8x1xf32, #tpu.memory_space<vmem>>, vector<8x1xf32>,
      %cst_76 = arith.constant 0.000000e+00 : f32
      %161 = vector.broadcast %cst_76 : f32 to vector<8x1xf32>
      %c0_77 = arith.constant 0 : index
      %c0_78 = arith.constant 0 : index
      %162 = vector.load %arg10[%c0_77, %c0_78] : memref<8x1xf32, #tpu.memory_space<vmem>>, vector<8x1xf32>
      tpu.vector_store %arg10[%c0_77, %c0_78], %161 {strides = array<i32>} : memref<8x1xf32, #tpu.memory_space<vmem>>, vector<8x1xf32>,
      %cst_79 = arith.constant 0.000000e+00 : f32
      %163 = vector.broadcast %cst_79 : f32 to vector<8x1xf32>
      %c0_80 = arith.constant 0 : index
      %c0_81 = arith.constant 0 : index
      %164 = vector.load %arg11[%c0_80, %c0_81] : memref<8x1xf32, #tpu.memory_space<vmem>>, vector<8x1xf32>
      tpu.vector_store %arg11[%c0_80, %c0_81], %163 {strides = array<i32>} : memref<8x1xf32, #tpu.memory_space<vmem>>, vector<8x1xf32>,
      %cst_82 = arith.constant -1.000000e+30 : f32
      %165 = vector.broadcast %cst_82 : f32 to vector<8x1xf32>
      %c0_83 = arith.constant 0 : index
      %c0_84 = arith.constant 0 : index
      %166 = vector.load %arg12[%c0_83, %c0_84] : memref<8x1xf32, #tpu.memory_space<vmem>>, vector<8x1xf32>
      tpu.vector_store %arg12[%c0_83, %c0_84], %165 {strides = array<i32>} : memref<8x1xf32, #tpu.memory_space<vmem>>, vector<8x1xf32>,
      %c0_i32_85 = arith.constant 0 : i32
      %167 = vector.broadcast %c0_i32_85 : i32 to vector<8x1xi32>
      %c0_86 = arith.constant 0 : index
      %c0_87 = arith.constant 0 : index
      %168 = vector.load %arg13[%c0_86, %c0_87] : memref<8x1xi32, #tpu.memory_space<vmem>>, vector<8x1xi32>
      tpu.vector_store %arg13[%c0_86, %c0_87], %167 {strides = array<i32>} : memref<8x1xi32, #tpu.memory_space<vmem>>, vector<8x1xi32>,
    } else {
    }
    %6 = arith.extf %1 : vector<128x128xbf16> to vector<128x128xf32>
    %7 = arith.mulf %6, %6 : vector<128x128xf32>
    %cst = arith.constant dense<0.000000e+00> : vector<128xf32>
    %8 = vector.multi_reduction <add>, %7, %cst [0] : vector<128x128xf32> to vector<128xf32>
    %9 = vector.shape_cast %8 : vector<128xf32> to vector<1x128xf32>
    %10 = math.sqrt %9 : vector<1x128xf32>
    %cst_6 = arith.constant 9.99999996E-13 : f32
    %11 = vector.broadcast %cst_6 : f32 to vector<1x128xf32>
    %12 = arith.maximumf %10, %11 : vector<1x128xf32>
    %cst_7 = arith.constant 1.000000e+00 : f32
    %13 = vector.broadcast %cst_7 : f32 to vector<1x128xf32>
    %14 = arith.divf %13, %12 : vector<1x128xf32>
    %cst_8 = arith.constant dense<0.000000e+00> : vector<8x128xf32>
    %15 = tpu.matmul %0, %1, %cst_8 {dimension_numbers = #tpu.dot_dimension_numbers<[1], [0], [0], [1], [0, 0, 1, 1], [], []>} : vector<8x128xbf16>, vector<128x128xbf16>, vector<8x128xf32> -> vector<8x128xf32>
    %16 = vector.broadcast %14 : vector<1x128xf32> to vector<8x128xf32>
    %17 = arith.mulf %15, %16 : vector<8x128xf32>
    %c0_9 = arith.constant 0 : index
    %c0_10 = arith.constant 0 : index
    %18 = vector.load %arg5[%c0_9, %c0_10] : memref<8x128xf32, #tpu.memory_space<vmem>>, vector<8x128xf32>
    tpu.vector_store %arg5[%c0_9, %c0_10], %17 {strides = array<i32>} : memref<8x128xf32, #tpu.memory_space<vmem>>, vector<8x128xf32>,
    %19 = tpu.iota {dimensions = array<i32: 1>} : vector<8x128xi32>
    %c128_i32 = arith.constant 128 : i32
    %20 = arith.muli %arg1, %c128_i32 : i32
    %21 = vector.broadcast %20 : i32 to vector<8x128xi32>
    %22 = arith.addi %19, %21 : vector<8x128xi32>
    %23 = vector.broadcast %2 : vector<8x1xi32> to vector<8x128xi32>
    %24 = arith.cmpi eq, %22, %23 : vector<8x128xi32>
    %25 = arith.extui %24 : vector<8x128xi1> to vector<8x128xi32>
    %26 = arith.sitofp %25 : vector<8x128xi32> to vector<8x128xf32>
    %cst_11 = arith.constant dense<0.000000e+00> : vector<8xf32>
    %27 = vector.multi_reduction <add>, %26, %cst_11 [1] : vector<8x128xf32> to vector<8xf32>
    %28 = vector.shape_cast %27 : vector<8xf32> to vector<8x1xf32>
    %c0_12 = arith.constant 0 : index
    %c0_13 = arith.constant 0 : index
    %29 = vector.load %arg8[%c0_12, %c0_13] : memref<8x1xf32, #tpu.memory_space<vmem>>, vector<8x1xf32>
    %30 = arith.mulf %17, %26 : vector<8x128xf32>
    %cst_14 = arith.constant dense<0.000000e+00> : vector<8xf32>
    %31 = vector.multi_reduction <add>, %30, %cst_14 [1] : vector<8x128xf32> to vector<8xf32>
    %32 = vector.shape_cast %31 : vector<8xf32> to vector<8x1xf32>
    %cst_15 = arith.constant 9.99999996E-13 : f32
    %33 = vector.broadcast %cst_15 : f32 to vector<8x1xf32>
    %34 = arith.maximumf %29, %33 : vector<8x1xf32>
    %35 = arith.divf %32, %34 : vector<8x1xf32>
    %cst_16 = arith.constant -1.000000e+00 : f32
    %cst_17 = arith.constant 1.000000e+00 : f32
    %36 = vector.broadcast %cst_16 : f32 to vector<8x1xf32>
    %37 = arith.maximumf %36, %35 : vector<8x1xf32>
    %38 = vector.broadcast %cst_17 : f32 to vector<8x1xf32>
    %39 = arith.minimumf %38, %37 : vector<8x1xf32>
    %40 = math.absf %39 : vector<8x1xf32>
    %cst_18 = arith.constant -0.0012624911 : f32
    %41 = vector.broadcast %cst_18 : f32 to vector<8x1xf32>
    %42 = arith.mulf %41, %40 : vector<8x1xf32>
    %cst_19 = arith.constant 6.670090e-03 : f32
    %43 = vector.broadcast %cst_19 : f32 to vector<8x1xf32>
    %44 = arith.addf %42, %43 : vector<8x1xf32>
    %45 = arith.mulf %44, %40 : vector<8x1xf32>
    %cst_20 = arith.constant -0.0170881264 : f32
    %46 = vector.broadcast %cst_20 : f32 to vector<8x1xf32>
    %47 = arith.addf %45, %46 : vector<8x1xf32>
    %48 = arith.mulf %47, %40 : vector<8x1xf32>
    %cst_21 = arith.constant 0.0308918804 : f32
    %49 = vector.broadcast %cst_21 : f32 to vector<8x1xf32>
    %50 = arith.addf %48, %49 : vector<8x1xf32>
    %51 = arith.mulf %50, %40 : vector<8x1xf32>
    %cst_22 = arith.constant -0.0501743034 : f32
    %52 = vector.broadcast %cst_22 : f32 to vector<8x1xf32>
    %53 = arith.addf %51, %52 : vector<8x1xf32>
    %54 = arith.mulf %53, %40 : vector<8x1xf32>
    %cst_23 = arith.constant 0.0889789909 : f32
    %55 = vector.broadcast %cst_23 : f32 to vector<8x1xf32>
    %56 = arith.addf %54, %55 : vector<8x1xf32>
    %57 = arith.mulf %56, %40 : vector<8x1xf32>
    %cst_24 = arith.constant -0.214598805 : f32
    %58 = vector.broadcast %cst_24 : f32 to vector<8x1xf32>
    %59 = arith.addf %57, %58 : vector<8x1xf32>
    %60 = arith.mulf %59, %40 : vector<8x1xf32>
    %cst_25 = arith.constant 1.57079625 : f32
    %61 = vector.broadcast %cst_25 : f32 to vector<8x1xf32>
    %62 = arith.addf %60, %61 : vector<8x1xf32>
    %cst_26 = arith.constant 1.000000e+00 : f32
    %63 = vector.broadcast %cst_26 : f32 to vector<8x1xf32>
    %64 = arith.subf %63, %40 : vector<8x1xf32>
    %cst_27 = arith.constant 0.000000e+00 : f32
    %65 = vector.broadcast %cst_27 : f32 to vector<8x1xf32>
    %66 = arith.maximumf %64, %65 : vector<8x1xf32>
    %67 = math.sqrt %66 : vector<8x1xf32>
    %68 = arith.mulf %62, %67 : vector<8x1xf32>
    %cst_28 = arith.constant 0.000000e+00 : f32
    %69 = vector.broadcast %cst_28 : f32 to vector<8x1xf32>
    %70 = arith.cmpf olt, %39, %69 : vector<8x1xf32>
    %cst_29 = arith.constant 3.14159274 : f32
    %71 = vector.broadcast %cst_29 : f32 to vector<8x1xf32>
    %72 = arith.subf %71, %68 : vector<8x1xf32>
    %73 = arith.select %70, %72, %68 : vector<8x1xi1>, vector<8x1xf32>
    %cst_30 = arith.constant 2.000000e+00 : f32
    %74 = vector.broadcast %cst_30 : f32 to vector<8x1xf32>
    %75 = arith.mulf %74, %73 : vector<8x1xf32>
    %cst_31 = arith.constant 0.318309873 : f32
    %76 = vector.broadcast %cst_31 : f32 to vector<8x1xf32>
    %77 = arith.mulf %75, %76 : vector<8x1xf32>
    %78 = math.floor %77 : vector<8x1xf32>
    %cst_32 = arith.constant 5.000000e-01 : f32
    %79 = vector.broadcast %cst_32 : f32 to vector<8x1xf32>
    %80 = arith.mulf %78, %79 : vector<8x1xf32>
    %81 = math.floor %80 : vector<8x1xf32>
    %cst_33 = arith.constant 2.000000e+00 : f32
    %82 = vector.broadcast %cst_33 : f32 to vector<8x1xf32>
    %83 = arith.mulf %82, %81 : vector<8x1xf32>
    %84 = arith.subf %78, %83 : vector<8x1xf32>
    %cst_34 = arith.constant 2.000000e+00 : f32
    %85 = vector.broadcast %cst_34 : f32 to vector<8x1xf32>
    %86 = arith.mulf %85, %84 : vector<8x1xf32>
    %cst_35 = arith.constant 1.000000e+00 : f32
    %87 = vector.broadcast %cst_35 : f32 to vector<8x1xf32>
    %88 = arith.subf %87, %86 : vector<8x1xf32>
    %89 = math.cos %75 : vector<8x1xf32>
    %90 = arith.mulf %88, %89 : vector<8x1xf32>
    %cst_36 = arith.constant 2.000000e+00 : f32
    %91 = vector.broadcast %cst_36 : f32 to vector<8x1xf32>
    %92 = arith.mulf %91, %78 : vector<8x1xf32>
    %93 = arith.subf %90, %92 : vector<8x1xf32>
    %94 = arith.mulf %93, %29 : vector<8x1xf32>
    %cst_37 = arith.constant 1.000000e+00 : f32
    %cst_38 = arith.constant 6.66222535E-4 : f32
    %95 = arith.subf %cst_37, %cst_38 : f32
    %96 = vector.broadcast %95 : f32 to vector<8x1xf32>
    %97 = arith.mulf %32, %96 : vector<8x1xf32>
    %cst_39 = arith.constant 6.66222535E-4 : f32
    %98 = vector.broadcast %cst_39 : f32 to vector<8x1xf32>
    %99 = arith.mulf %94, %98 : vector<8x1xf32>
    %100 = arith.addf %97, %99 : vector<8x1xf32>
    %101 = arith.subf %100, %32 : vector<8x1xf32>
    %102 = vector.broadcast %101 : vector<8x1xf32> to vector<8x128xf32>
    %103 = arith.mulf %102, %26 : vector<8x128xf32>
    %104 = arith.addf %17, %103 : vector<8x128xf32>
    %105 = tpu.iota {dimensions = array<i32: 1>} : vector<1x128xi32>
    %c128_i32_40 = arith.constant 128 : i32
    %106 = arith.muli %arg1, %c128_i32_40 : i32
    %107 = vector.broadcast %106 : i32 to vector<1x128xi32>
    %108 = arith.addi %105, %107 : vector<1x128xi32>
    %c32_i32 = arith.constant 32 : i32
    %109 = vector.broadcast %c32_i32 : i32 to vector<1x128xi32>
    %110 = arith.cmpi slt, %108, %109 : vector<1x128xi32>
    %cst_41 = arith.constant 0.000000e+00 : f32
    %cst_42 = arith.constant -1.000000e+30 : f32
    %111 = vector.broadcast %cst_41 : f32 to vector<1x128xf32>
    %112 = vector.broadcast %cst_42 : f32 to vector<1x128xf32>
    %113 = arith.select %110, %111, %112 : vector<1x128xi1>, vector<1x128xf32>
    %114 = vector.broadcast %113 : vector<1x128xf32> to vector<8x128xf32>
    %115 = arith.addf %104, %114 : vector<8x128xf32>
    %c0_43 = arith.constant 0 : index
    %c0_44 = arith.constant 0 : index
    %116 = vector.load %arg9[%c0_43, %c0_44] : memref<8x1xf32, #tpu.memory_space<vmem>>, vector<8x1xf32>
    %cst_45 = arith.constant dense<0xFF800000> : vector<8xf32>
    %117 = vector.multi_reduction <maximumf>, %115, %cst_45 [1] : vector<8x128xf32> to vector<8xf32>
    %118 = vector.shape_cast %117 : vector<8xf32> to vector<8x1xf32>
    %119 = arith.maximumf %116, %118 : vector<8x1xf32>
    %120 = arith.subf %116, %119 : vector<8x1xf32>
    %121 = math.exp %120 : vector<8x1xf32>
    %c0_46 = arith.constant 0 : index
    %c0_47 = arith.constant 0 : index
    %122 = vector.load %arg10[%c0_46, %c0_47] : memref<8x1xf32, #tpu.memory_space<vmem>>, vector<8x1xf32>
    %123 = arith.mulf %121, %122 : vector<8x1xf32>
    %124 = vector.broadcast %119 : vector<8x1xf32> to vector<8x128xf32>
    %125 = arith.subf %115, %124 : vector<8x128xf32>
    %126 = math.exp %125 : vector<8x128xf32>
    %cst_48 = arith.constant dense<0.000000e+00> : vector<8xf32>
    %127 = vector.multi_reduction <add>, %126, %cst_48 [1] : vector<8x128xf32> to vector<8xf32>
    %128 = vector.shape_cast %127 : vector<8xf32> to vector<8x1xf32>
    %129 = arith.addf %123, %128 : vector<8x1xf32>
    %c0_49 = arith.constant 0 : index
    %c0_50 = arith.constant 0 : index
    %130 = vector.load %arg10[%c0_49, %c0_50] : memref<8x1xf32, #tpu.memory_space<vmem>>, vector<8x1xf32>
    tpu.vector_store %arg10[%c0_49, %c0_50], %129 {strides = array<i32>} : memref<8x1xf32, #tpu.memory_space<vmem>>, vector<8x1xf32>,
    %c0_51 = arith.constant 0 : index
    %c0_52 = arith.constant 0 : index
    %131 = vector.load %arg9[%c0_51, %c0_52] : memref<8x1xf32, #tpu.memory_space<vmem>>, vector<8x1xf32>
    tpu.vector_store %arg9[%c0_51, %c0_52], %119 {strides = array<i32>} : memref<8x1xf32, #tpu.memory_space<vmem>>, vector<8x1xf32>,
    %c0_53 = arith.constant 0 : index
    %c0_54 = arith.constant 0 : index
    %132 = vector.load %arg11[%c0_53, %c0_54] : memref<8x1xf32, #tpu.memory_space<vmem>>, vector<8x1xf32>
    %133 = arith.mulf %100, %28 : vector<8x1xf32>
    %134 = arith.addf %132, %133 : vector<8x1xf32>
    %c0_55 = arith.constant 0 : index
    %c0_56 = arith.constant 0 : index
    %135 = vector.load %arg11[%c0_55, %c0_56] : memref<8x1xf32, #tpu.memory_space<vmem>>, vector<8x1xf32>
    tpu.vector_store %arg11[%c0_55, %c0_56], %134 {strides = array<i32>} : memref<8x1xf32, #tpu.memory_space<vmem>>, vector<8x1xf32>,
    %136 = vector.broadcast %118 : vector<8x1xf32> to vector<8x128xf32>
    %137 = arith.cmpf oeq, %115, %136 : vector<8x128xf32>
    %c1073741824_i32 = arith.constant 1073741824 : i32
    %138 = vector.broadcast %c1073741824_i32 : i32 to vector<8x128xi32>
    %139 = arith.select %137, %22, %138 : vector<8x128xi1>, vector<8x128xi32>
    %cst_57 = arith.constant dense<2147483647> : vector<8xi32>
    %140 = vector.multi_reduction <minsi>, %139, %cst_57 [1] : vector<8x128xi32> to vector<8xi32>
    %141 = vector.shape_cast %140 : vector<8xi32> to vector<8x1xi32>
    %c0_58 = arith.constant 0 : index
    %c0_59 = arith.constant 0 : index
    %142 = vector.load %arg12[%c0_58, %c0_59] : memref<8x1xf32, #tpu.memory_space<vmem>>, vector<8x1xf32>
    %143 = arith.cmpf ogt, %118, %142 : vector<8x1xf32>
    %c0_60 = arith.constant 0 : index
    %c0_61 = arith.constant 0 : index
    %144 = vector.load %arg13[%c0_60, %c0_61] : memref<8x1xi32, #tpu.memory_space<vmem>>, vector<8x1xi32>
    %145 = arith.select %143, %141, %144 : vector<8x1xi1>, vector<8x1xi32>
    %c0_62 = arith.constant 0 : index
    %c0_63 = arith.constant 0 : index
    %146 = vector.load %arg13[%c0_62, %c0_63] : memref<8x1xi32, #tpu.memory_space<vmem>>, vector<8x1xi32>
    tpu.vector_store %arg13[%c0_62, %c0_63], %145 {strides = array<i32>} : memref<8x1xi32, #tpu.memory_space<vmem>>, vector<8x1xi32>,
    %c0_64 = arith.constant 0 : index
    %c0_65 = arith.constant 0 : index
    %147 = vector.load %arg12[%c0_64, %c0_65] : memref<8x1xf32, #tpu.memory_space<vmem>>, vector<8x1xf32>
    %148 = arith.select %143, %118, %147 : vector<8x1xi1>, vector<8x1xf32>
    %c0_66 = arith.constant 0 : index
    %c0_67 = arith.constant 0 : index
    %149 = vector.load %arg12[%c0_66, %c0_67] : memref<8x1xf32, #tpu.memory_space<vmem>>, vector<8x1xf32>
    tpu.vector_store %arg12[%c0_66, %c0_67], %148 {strides = array<i32>} : memref<8x1xf32, #tpu.memory_space<vmem>>, vector<8x1xf32>,
    %c0_i32_68 = arith.constant 0 : i32
    %150 = arith.cmpi eq, %arg1, %c0_i32_68 : i32
    %151 = arith.extui %150 : i1 to i32
    %c0_i32_69 = arith.constant 0 : i32
    %152 = arith.cmpi ne, %151, %c0_i32_69 : i32
    scf.if %152 {
      %153 = tpu.iota {dimensions = array<i32: 0>} : vector<8x1xi32>
      %c8_i32 = arith.constant 8 : i32
      %154 = arith.muli %arg0, %c8_i32 : i32
      %155 = vector.broadcast %154 : i32 to vector<8x1xi32>
      %156 = arith.addi %153, %155 : vector<8x1xi32>
      %c8_i32_70 = arith.constant 8 : i32
      %157 = vector.broadcast %c8_i32_70 : i32 to vector<8x1xi32>
      %158 = arith.cmpi slt, %156, %157 : vector<8x1xi32>
      %159 = arith.extui %158 : vector<8x1xi1> to vector<8x1xi32>
      %160 = arith.sitofp %159 : vector<8x1xi32> to vector<8x1xf32>
      %c0_71 = arith.constant 0 : index
      %c0_72 = arith.constant 0 : index
      %161 = vector.load %arg10[%c0_71, %c0_72] : memref<8x1xf32, #tpu.memory_space<vmem>>, vector<8x1xf32>
      %162 = math.log %161 : vector<8x1xf32>
      %c0_73 = arith.constant 0 : index
      %c0_74 = arith.constant 0 : index
      %163 = vector.load %arg9[%c0_73, %c0_74] : memref<8x1xf32, #tpu.memory_space<vmem>>, vector<8x1xf32>
      %164 = arith.addf %162, %163 : vector<8x1xf32>
      %c0_75 = arith.constant 0 : index
      %c0_76 = arith.constant 0 : index
      %165 = vector.load %arg11[%c0_75, %c0_76] : memref<8x1xf32, #tpu.memory_space<vmem>>, vector<8x1xf32>
      %166 = arith.subf %164, %165 : vector<8x1xf32>
      %167 = arith.mulf %166, %160 : vector<8x1xf32>
      %c0_77 = arith.constant 0 : index
      %c0_78 = arith.constant 0 : index
      %168 = vector.load %arg6[%c0_77, %c0_78] : memref<8x1xf32, #tpu.memory_space<vmem>>, vector<8x1xf32>
      tpu.vector_store %arg6[%c0_77, %c0_78], %167 {strides = array<i32>} : memref<8x1xf32, #tpu.memory_space<vmem>>, vector<8x1xf32>,
      %c0_79 = arith.constant 0 : index
      %c0_80 = arith.constant 0 : index
      %169 = vector.load %arg13[%c0_79, %c0_80] : memref<8x1xi32, #tpu.memory_space<vmem>>, vector<8x1xi32>
      %170 = arith.cmpi eq, %169, %2 : vector<8x1xi32>
      %171 = arith.extui %170 : vector<8x1xi1> to vector<8x1xi32>
      %172 = arith.sitofp %171 : vector<8x1xi32> to vector<8x1xf32>
      %173 = arith.mulf %172, %160 : vector<8x1xf32>
      %c0_81 = arith.constant 0 : index
      %c0_82 = arith.constant 0 : index
      %174 = vector.load %arg7[%c0_81, %c0_82] : memref<8x1xf32, #tpu.memory_space<vmem>>, vector<8x1xf32>
      tpu.vector_store %arg7[%c0_81, %c0_82], %173 {strides = array<i32>} : memref<8x1xf32, #tpu.memory_space<vmem>>, vector<8x1xf32>,
    } else {
    }
    return
  }
  func.func @transform_0(%arg0: i32, %arg1: i32) -> (i32, i32) {
    %c0_i32 = arith.constant 0 : i32
    %c0_i32_0 = arith.constant 0 : i32
    return %arg0, %c0_i32 : i32, i32
  }
  func.func @transform_1(%arg0: i32, %arg1: i32) -> (i32, i32) {
    %c0_i32 = arith.constant 0 : i32
    %c0_i32_0 = arith.constant 0 : i32
    return %c0_i32, %arg1 : i32, i32
  }
  func.func @transform_2(%arg0: i32, %arg1: i32) -> (i32, i32) {
    %c0_i32 = arith.constant 0 : i32
    %c0_i32_0 = arith.constant 0 : i32
    return %arg0, %c0_i32 : i32, i32
  }
  func.func @transform_3(%arg0: i32, %arg1: i32) -> (i32, i32) {
    %c0_i32 = arith.constant 0 : i32
    return %arg0, %arg1 : i32, i32
  }
  func.func @transform_4(%arg0: i32, %arg1: i32) -> (i32, i32) {
    %c0_i32 = arith.constant 0 : i32
    %c0_i32_0 = arith.constant 0 : i32
    return %arg0, %c0_i32 : i32, i32
  }
  func.func @transform_5(%arg0: i32, %arg1: i32) -> (i32, i32) {
    %c0_i32 = arith.constant 0 : i32
    %c0_i32_0 = arith.constant 0 : i32
    return %arg0, %c0_i32 : i32, i32
  }
}

</mosaic_0001>

<bundles_post_ra>
// kernel: tpu_custom_call.1
= control target key start
LH: loop header
LB: loop body
LE: loop exit
PB: predicated region body
PF: predicated region fallthrough
CT: control target
= control target key end

     0   :  { %11 = vsyncpa [#allocation9], 0  ;;  %s822_s0 = inlined_call_operand.vmem [shape: bf16[8,128], index: 0, kind: input, shape index: {}]   ;;  %s823_s1 = inlined_call_operand.hbm [shape: bf16[128,128], index: 1, kind: input, shape index: {}]   ;;  %s824_s2 = inlined_call_operand.vmem [shape: s32[8,1], index: 2, kind: input, shape index: {}]   ;;  %s825_s3 = inlined_call_operand.hbm [shape: f32[8,128], index: 3, kind: output, shape index: {0}]   ;;  %s826_s4 = inlined_call_operand.vmem [shape: f32[8,1], index: 4, kind: output, shape index: {1}]   ;;  %s827_s5 = inlined_call_operand.vmem [shape: f32[8,1], index: 5, kind: output, shape index: {2}]  }
   0x1   :  { %12 = vsyncpa [#allocation10], 0  ;;  %s654_s18 = smov [#allocation8]   ;;  %s606_s22 = scalar_lea.hbm %s823_s1, 1024 }
   0x2   :  { %s20_s19 = sshll.u32 %s654_s18, 4  ;;  %p607_p0 = scmp.ne.s32.totalorder %s823_s1, %s606_s22  ;;  %s21_s19 = int_to_ptr.vmem [resolvable:$true] %s20_s19 }
   0x3   :  { %p610_p1 = scmp.lt.u32.totalorder %s606_s22, %s823_s1 }
   0x5   :  { %p612_p2 = pnand %p610_p1, %p607_p0 }
   0x7   :  { %615 = shalt.err (!%p612_p2)
}
   0x8   :  { %s616_s27 = scalar_lea.vmem %s21_s19, 1024  ;;  %p621_p4 = scmp.lt.s32.totalorder %s21_s19, %s21_s19 }
   0x9   :  { %p617_p3 = scmp.ne.s32.totalorder %s21_s19, %s616_s27  ;;  %p622_p5 = scmp.lt.s32.totalorder %s616_s27, %s616_s27 }
   0xb   :  { %p623_p6 = por %p622_p5, %p621_p4 }
   0xd   :  { %p624_p7 = pnand %p623_p6, %p617_p3 }
   0xf   :  { %627 = shalt.err (!%p624_p7)
}
  0x10   :  { %s655_s28 = smov 64   ;;  %s656_s29 = smov 4  }
  0x11   :  { %26 = dma.hbm_to_vmem [thread:$0]  %s823_s1, 1024, %s21_s19, [#allocation9], %s655_s28, %s655_s28, %s656_s29  }
  0x12   :  { %650 = dma.done.wait [#allocation9], 1024  }
  0x13   :  { %651 = vsyncadd [#allocation9], 4294966272  ;;  %vm66_vm0 = vcmask 7168   ;;  %v657_v0 = vmov 0.0   ;;  %vm658_vm1 = vmmov 0   ;;  %v659_v1 = vmov 0  }
  0x14   :  { %530 = vmatprep.subr.bf16.mxu0 %v657_v0  ;;  %546 = vmatprep.mubr.msk.bf16.mxu0 %vm658_vm1, %v657_v0  ;;  %72 = vst.msk [vmem:[#allocation7] sm:$0xff] %vm66_vm0, %v659_v1  ;;  %69 = vst.msk [vmem:[#allocation4] sm:$0xff] %vm66_vm0, %v657_v0  ;;  %v34_v2 = vld [vmem:[#allocation8] sm:$0xff]   ;;  %v36_v3 = vld [vmem:[#allocation8 + $0x8] sm:$0xff]  }
  0x15   :  { %70 = vst.msk [vmem:[#allocation5] sm:$0xff] %vm66_vm0, %v657_v0  ;;  %568 = vset.pattern.permute.xlu0 %v659_v1  ;;  %569 = vset.pattern.permute.xlu1 %v659_v1  ;;  %v73_v4 = vunpack.c.l.bf16 %v34_v2  ;;  %v74_v5 = vunpack.c.h.bf16 %v34_v2  ;;  %v75_v6 = vunpack.c.l.bf16 %v36_v3  ;;  %v76_v7 = vunpack.c.h.bf16 %v36_v3  ;;  %v38_v8 = vld [vmem:[#allocation8 + $0x10] sm:$0xff]   ;;  %v40_v17 = vld [vmem:[#allocation8 + $0x18] sm:$0xff]   ;;  %v42_v24 = vld [vmem:[#allocation8 + $0x20] sm:$0xff]  }
  0x16   :  { %531 = vmatpush3.bf16.msra.mxu0 %v34_v2  ;;  %v77_v12 = vunpack.c.l.bf16 %v38_v8  ;;  %v720_v13 = vld [vmem:[%s824_s2] sm:$0xff]  ;;  %v78_v16 = vunpack.c.h.bf16 %v38_v8  ;;  %v79_v20 = vunpack.c.l.bf16 %v40_v17  ;;  %v80_v23 = vunpack.c.h.bf16 %v40_v17  ;;  %v44_v31 = vld [vmem:[#allocation8 + $0x28] sm:$0xff]   ;;  %v48_v45 = vld [vmem:[#allocation8 + $0x38] sm:$0xff]  }
  0x17   :  { %v89_v9 = vmul.f32 %v73_v4, %v73_v4  ;;  %v90_v10 = vmul.f32 %v74_v5, %v74_v5  ;;  %v91_v11 = vmul.f32 %v75_v6, %v75_v6  ;;  %532 = vmatprep.subr.bf16.mxu0 %v657_v0  ;;  %232 = vperm.xlu0 %568, %v720_v13   ;;  %v81_v27 = vunpack.c.l.bf16 %v42_v24  ;;  %v46_v38 = vld [vmem:[#allocation8 + $0x30] sm:$0xff]  }
  0x18   :  { %v92_v15 = vmul.f32 %v76_v7, %v76_v7  ;;  %v93_v19 = vmul.f32 %v77_v12, %v77_v12  ;;  %v94_v22 = vmul.f32 %v78_v16, %v78_v16  ;;  %v95_v26 = vmul.f32 %v79_v20, %v79_v20  ;;  %v33_v52 = vld [vmem:[%s822_s0] sm:$0xf]  ;;  %s667_s0 = smov [#allocation11]  }
  0x19   :  { %v105_v14 = vadd.f32 %v90_v10, %v89_v9  ;;  %v96_v29 = vmul.f32 %v80_v23, %v80_v23  ;;  %v82_v30 = vunpack.c.h.bf16 %v42_v24  ;;  %v97_v33 = vmul.f32 %v81_v27, %v81_v27  ;;  %s489_s9 = sshll.u32 %s667_s0, 4  ;;  %s490_s9 = int_to_ptr.vmem [resolvable:$true] %s489_s9 }
  0x1a   :  { %533 = vmatpush3.bf16.msra.mxu0 %v36_v3  ;;  %v83_v34 = vunpack.c.l.bf16 %v44_v31  ;;  %v84_v37 = vunpack.c.h.bf16 %v44_v31  ;;  %v85_v41 = vunpack.c.l.bf16 %v46_v38  ;;  %v86_v44 = vunpack.c.h.bf16 %v46_v38  ;;  %s628_s10 = scalar_lea.vmem %s490_s9, 128  ;;  %p633_p9 = scmp.lt.s32.totalorder %s490_s9, %s490_s9 }
  0x1b   :  { %v106_v18 = vadd.f32 %v105_v14, %v91_v11  ;;  %534 = vmatprep.subr.bf16.mxu0 %v657_v0  ;;  %v98_v36 = vmul.f32 %v82_v30, %v82_v30  ;;  %v87_v48 = vunpack.c.l.bf16 %v48_v45  ;;  %v88_v51 = vunpack.c.h.bf16 %v48_v45  ;;  %p629_p8 = scmp.ne.s32.totalorder %s490_s9, %s628_s10  ;;  %p634_p10 = scmp.lt.s32.totalorder %s628_s10, %s628_s10 }
  0x1c   :  { %v99_v40 = vmul.f32 %v83_v34, %v83_v34  ;;  %v100_v43 = vmul.f32 %v84_v37, %v84_v37  ;;  %v101_v47 = vmul.f32 %v85_v41, %v85_v41  ;;  %v102_v50 = vmul.f32 %v86_v44, %v86_v44 }
  0x1d   :  { %v107_v21 = vadd.f32 %v106_v18, %v92_v15  ;;  %v103_v54 = vmul.f32 %v87_v48, %v87_v48  ;;  %v55_v55 = vunpack.c.l.bf16 %v33_v52  ;;  %v104_v57 = vmul.f32 %v88_v51, %v88_v51  ;;  %p635_p11 = por %p634_p10, %p633_p9 }
  0x1e   :  { %535 = vmatpush3.bf16.msra.mxu0 %v38_v8  ;;  %v226_v18 = vlaneseq }
  0x1f   :  { %v108_v25 = vadd.f32 %v107_v21, %v93_v19  ;;  %536 = vmatprep.subr.bf16.mxu0 %v657_v0  ;;  %v56_v59 = vmul.f32 %v55_v55, %v55_v55  ;;  %p636_p12 = pnand %p635_p11, %p629_p8 }
  0x20   :  { %v734_v19 = vand.u32 127, %v226_v18 }
  0x21   :  { %v109_v28 = vadd.f32 %v108_v25, %v94_v22 }
  0x22   :  { %537 = vmatpush3.bf16.msra.mxu0 %v40_v17 }
  0x23   :  { %v110_v32 = vadd.f32 %v109_v28, %v95_v26  ;;  %538 = vmatprep.subr.bf16.mxu0 %v657_v0 }
  0x25   :  { %v111_v35 = vadd.f32 %v110_v32, %v96_v29 }
  0x26   :  { %539 = vmatpush3.bf16.msra.mxu0 %v42_v24 }
  0x27   :  { %v112_v39 = vadd.f32 %v111_v35, %v97_v33  ;;  %540 = vmatprep.subr.bf16.mxu0 %v657_v0 }
  0x29   :  { %v113_v42 = vadd.f32 %v112_v39, %v98_v36 }
  0x2a   :  { %541 = vmatpush3.bf16.msra.mxu0 %v44_v31 }
  0x2b   :  { %v114_v46 = vadd.f32 %v113_v42, %v99_v40  ;;  %542 = vmatprep.subr.bf16.mxu0 %v657_v0 }
  0x2d   :  { %v115_v49 = vadd.f32 %v114_v46, %v100_v43 }
  0x2e   :  { %543 = vmatpush3.bf16.msra.mxu0 %v46_v38 }
  0x2f   :  { %v116_v53 = vadd.f32 %v115_v49, %v101_v47  ;;  %544 = vmatprep.subr.bf16.mxu0 %v657_v0 }
  0x31   :  { %v117_v56 = vadd.f32 %v116_v53, %v102_v50 }
  0x32   :  { %545 = vmatpush3.bf16.msra.mxu0 %v48_v45 }
  0x33   :  { %v118_v58 = vadd.f32 %v117_v56, %v103_v54 }
  0x35   :  { %v119_v60 = vadd.f32 %v118_v58, %v104_v57  ;;  %547 = vmatmul.mubr.bf16.vlgmr.msra.gmra.mrb[0].mxu0 %v33_v52 }
  0x36   :  { %57 = vadd.xlane.f32.xlu0 %v56_v59 }
  0x37   :  { %v120_v63 = vrot.slane %v119_v60, 4 }
  0x39   :  { %v121_v1 = vadd.f32 %v120_v63, %v119_v60 }
  0x3b   :  { %v122_v5 = vrot.slane %v121_v1, 2 }
  0x3d   :  { %v123_v8 = vadd.f32 %v122_v5, %v121_v1 }
  0x3f   :  { %v124_v9 = vrot.slane %v123_v8, 1 }
  0x41   :  { %v125_v10 = vadd.f32 %v124_v9, %v123_v8  ;;  %v661_v9 = vmov 2475754826  }
  0x43   :  { %vm128_vm4 = vcmp.eq.f32.partialorder %v125_v10, inf  ;;  %v131_v14 = vand.u32 2147483648, %v125_v10  ;;  %vm130_vm5 = vcmp.eq.f32.partialorder %v125_v10, 0.0 }
  0x96   :  { %v233_v61 = vpop.permute.xlu0 %232 }
  0x97   :  { %vm234_vm6 = vcmp.eq.s32.totalorder %v734_v19, %v233_v61 }
  0x98   :  { %v738_v21 = vsel %vm234_vm6, 1.0, %v657_v0 }
  0xc3   :  { %v58_v62 = vpop.xlane.xlu0 %57 }
  0xc4   :  { %586 = vrsqrt.f32 %v58_v62  ;;  %vm61_vm2 = vcmp.eq.f32.partialorder %v58_v62, inf  ;;  %v64_v3 = vand.u32 2147483648, %v58_v62  ;;  %vm63_vm3 = vcmp.eq.f32.partialorder %v58_v62, 0.0 }
  0xc5   :  { %588 = vrsqrt.f32 %v125_v10 }
  0xce   :  { %v587_v2 = vpop.eup %586 }
  0xcf   :  { %v60_v4 = vmul.f32 %v587_v2, %v58_v62  ;;  %v589_v11 = vpop.eup %588 }
  0xd0   :  { %v127_v12 = vmul.f32 %v589_v11, %v125_v10 }
  0xd1   :  { %v62_v6 = vsel %vm61_vm2, %v58_v62, %v60_v4 }
  0xd2   :  { %v65_v7 = vsel %vm63_vm3, %v64_v3, %v62_v6  ;;  %v129_v15 = vsel %vm128_vm4, %v125_v10, %v127_v12  ;;  %v662_v12 = vmov 2131351028  }
  0xd3   :  { %67 = vst.msk [vmem:[#allocation2] sm:$0xff] %vm66_vm0, %v65_v7  ;;  %v132_v16 = vsel %vm130_vm5, %v131_v14, %v129_v15  ;;  %v660_v7 = vmov 683565275  }
  0xd4   :  { %v133_v17 = vmax.f32 %v132_v16, 1e-12  ;;  %v663_v16 = vmov 2102212464  }
  0xd6   :  { %590 = vrcp.f32 %v133_v17 }
  0xda   :  { %v745_v28 = vld [vmem:[#allocation2] sm:$0xff] }
  0xdb   :  { %v243_v29 = vmax.f32 %v745_v28, 1e-12 }
  0xdd   :  { %592 = vrcp.f32 %v243_v29 }
  0xe0   :  { %v591_v20 = vpop.eup %590 }
  0xe7   :  { %v593_v30 = vpop.eup %592 }
 0x108   :  { %v218_v22 = vpop.f32.mrb[0].mxu0 }
 0x109   :  { %v740_v23 = vmul.f32 %v591_v20, %v218_v22  ;;  %v548_v24 = vpop.f32.mrb[1].mxu0  ;;  %v664_v20 = vmov 920167782  }
 0x10a   :  { %v221_v25 = vpop.f32.mrb[2].mxu0 }
 0x10b   :  { %225 = vst [vmem:[#allocation11] sm:$0xff] %v740_v23  ;;  %v549_v26 = vpop.f32.mrb[3].mxu0  ;;  %v240_v27 = vmul.f32 %v738_v21, %v740_v23  ;;  %v665_v25 = vmov 1326507024  }
 0x10d   :  { %241 = vadd.xlane.f32.xlu1 %v240_v27 }
 0x19a   :  { %v748_v31 = vpop.xlane.xlu1 %241 }
 0x19b   :  { %v245_v32 = vmul.f32 %v593_v30, %v748_v31 }
 0x19d   :  { %v515_v33 = vclamps-f32 %v245_v32, 1.0 }
 0x19f   :  { %v248_v34 = vand.u32 2147483647, %v515_v33  ;;  %vm273_vm9 = vcmp.lt.f32.partialorder %v515_v33, 0.0 }
 0x1a1   :  { %v249_v35 = vmul.f32 -0.0012624911, %v248_v34  ;;  %v263_v36 = vsub.f32 1.0, %v248_v34 }
 0x1a3   :  { %v250_v37 = vadd.f32 0.00667009, %v249_v35  ;;  %v264_v38 = vmax.f32 %v263_v36, 0.0 }
 0x1a5   :  { %v251_v39 = vmul.f32 %v250_v37, %v248_v34  ;;  %594 = vrsqrt.f32 %v264_v38  ;;  %vm267_vm7 = vcmp.eq.f32.partialorder %v264_v38, inf  ;;  %v270_v53 = vand.u32 2147483648, %v264_v38 }
 0x1a6   :  { %vm269_vm8 = vcmp.eq.f32.partialorder %v264_v38, 0.0 }
 0x1a7   :  { %v252_v40 = vadd.f32 -0.017088126, %v251_v39 }
 0x1a9   :  { %v253_v41 = vmul.f32 %v252_v40, %v248_v34 }
 0x1ab   :  { %v254_v42 = vadd.f32 0.03089188, %v253_v41 }
 0x1ad   :  { %v255_v43 = vmul.f32 %v254_v42, %v248_v34 }
 0x1af   :  { %v256_v44 = vadd.f32 -0.050174303, %v255_v43  ;;  %v595_v46 = vpop.eup %594 }
 0x1b0   :  { %v266_v49 = vmul.f32 %v595_v46, %v264_v38 }
 0x1b1   :  { %v257_v45 = vmul.f32 %v256_v44, %v248_v34 }
 0x1b2   :  { %v268_v52 = vsel %vm267_vm7, %v264_v38, %v266_v49 }
 0x1b3   :  { %v258_v47 = vadd.f32 0.08897899, %v257_v45  ;;  %v271_v55 = vsel %vm269_vm8, %v270_v53, %v268_v52  ;;  %vm403_vm8 = vcmp.lt.s32.totalorder %v734_v19, 32 }
 0x1b5   :  { %v259_v48 = vmul.f32 %v258_v47, %v248_v34 }
 0x1b7   :  { %v260_v50 = vadd.f32 -0.2145988, %v259_v48 }
 0x1b9   :  { %v261_v51 = vmul.f32 %v260_v50, %v248_v34 }
 0x1bb   :  { %v262_v54 = vadd.f32 1.5707963, %v261_v51 }
 0x1bd   :  { %v272_v56 = vmul.f32 %v271_v55, %v262_v54 }
 0x1bf   :  { %v274_v57 = vsub.f32 3.1415927, %v272_v56 }
 0x1c1   :  { %v275_v58 = vsel %vm273_vm9, %v274_v57, %v272_v56 }
 0x1c2   :  { %v751_v59 = vmul.f32 2.0, %v275_v58 }
 0x1c4   :  { %v288_v60 = vand.u32 2139095040, %v751_v59  ;;  %v285_v1 = vand.u32 2147483647, %v751_v59  ;;  %vm287_vm2 = vcmp.lt.s32.totalorder %v751_v59, 0  ;;  %vm377_vm7 = vweird.f32 %v751_v59 }
 0x1c6   :  { %v289_v61 = vshrl.u32 %v288_v60, 23  ;;  %v292_v4 = vand.u32 8388607, %v285_v1  ;;  %vm286_vm3 = vcmp.le.f32.partialorder %v285_v1, 0.7853982 }
 0x1c8   :  { %v516_v62 = vadd.s32 4294967169, %v289_v61  ;;  %v293_v27 = vor.u32 8388608, %v292_v4 }
 0x1ca   :  { %v295_v63 = vadd.s32 1, %v516_v62  ;;  %v333_v43 = vshll.u32 %v293_v27, 8 }
 0x1cc   :  { %vm296_vm10 = vcmp.gt.s32.totalorder %v295_v63, 0 }
 0x1cd   :  { %v297_v2 = vsel %vm296_vm10, %v295_v63, 0 }
 0x1ce   :  { %v299_v3 = vand.u32 31, %v297_v2  ;;  %v298_v6 = vshrl.u32 %v297_v2, 5 }
 0x1d0   :  { %v300_v5 = vsub.s32 32, %v299_v3  ;;  %v302_v8 = vshll.u32 %v660_v7, %v299_v3  ;;  %v305_v10 = vshll.u32 %v661_v9, %v299_v3  ;;  %v308_v15 = vshll.u32 %v662_v12, %v299_v3 }
 0x1d1   :  { %v311_v17 = vshll.u32 %v663_v16, %v299_v3  ;;  %v314_v24 = vshll.u32 %v664_v20, %v299_v3  ;;  %vm317_vm11 = vcmp.lt.s32.totalorder %v298_v6, 1  ;;  %vm319_vm12 = vcmp.lt.s32.totalorder %v298_v6, 3 }
 0x1d2   :  { %v303_v11 = vshrl.u32 %v661_v9, %v300_v5  ;;  %v306_v14 = vshrl.u32 %v662_v12, %v300_v5  ;;  %v309_v18 = vshrl.u32 %v663_v16, %v300_v5  ;;  %v312_v22 = vshrl.u32 %v664_v20, %v300_v5 }
 0x1d3   :  { %v315_v26 = vshrl.u32 %v665_v25, %v300_v5  ;;  %v301_v35 = vshrl.u32 %v660_v7, %v300_v5  ;;  %vm320_vm13 = vcmp.lt.s32.totalorder %v298_v6, 4  ;;  %vm318_vm14 = vcmp.lt.s32.totalorder %v298_v6, 2 }
 0x1d4   :  { %v304_v29 = vor.u32 %v303_v11, %v302_v8  ;;  %v307_v30 = vor.u32 %v306_v14, %v305_v10  ;;  %v310_v32 = vor.u32 %v309_v18, %v308_v15  ;;  %v313_v33 = vor.u32 %v312_v22, %v311_v17 }
 0x1d5   :  { %v316_v34 = vor.u32 %v315_v26, %v314_v24  ;;  %v277_v11 = vmul.f32 0.31830987, %v751_v59 }
 0x1d6   :  { %v325_v36 = vsel %vm317_vm11, %v304_v29, %v307_v30  ;;  %v322_v37 = vsel %vm320_vm13, %v310_v32, 2102212464  ;;  %v326_v38 = vsel %vm320_vm13, %v313_v33, 920167782  ;;  %v329_v39 = vsel %vm317_vm11, %v307_v30, %v310_v32 }
 0x1d7   :  { %v330_v40 = vsel %vm320_vm13, %v316_v34, 1326507024  ;;  %v327_v41 = vsel %vm319_vm12, %v310_v32, %v326_v38  ;;  %v321_v44 = vsel %vm317_vm11, %v301_v35, %v304_v29  ;;  %v323_v45 = vsel %vm319_vm12, %v307_v30, %v322_v37 }
 0x1d8   :  { %v331_v42 = vsel %vm319_vm12, %v313_v33, %v330_v40  ;;  %v328_v46 = vsel %vm318_vm14, %v325_v36, %v327_v41  ;;  %v324_v52 = vsel %vm318_vm14, %v321_v44, %v323_v45  ;;  %v278_v16 = vfloor.f32 %v277_v11 }
 0x1d9   :  { %v332_v47 = vsel %vm318_vm14, %v329_v39, %v331_v42  ;;  %v760_v50 = vmul.u32.u64.low %v333_v43, %v328_v46  ;;  %v761_v51 = vmul.u32.u64.high %v333_v43, %v328_v46, %v760_v50  ;;  %v340_v54 = vmul.u32 %v333_v43, %v324_v52 }
 0x1da   :  { %v757_v48 = vmul.u32.u64.low %v333_v43, %v332_v47  ;;  %v758_v49 = vmul.u32.u64.high %v333_v43, %v332_v47, %v757_v48  ;;  %v279_v22 = vmul.f32 0.5, %v278_v16  ;;  %v389_v46 = vmul.f32 2.0, %v278_v16 }
 0x1db   :  { %v343_v53 = vadd.s32 1, %v761_v51 }
 0x1dc   :  { %vm342_vm15 = vc.u32 %v758_v49, %v760_v50  ;;  %v341_v5 = vadd.s32 %v760_v50, %v758_v49  ;;  %v280_v27 = vfloor.f32 %v279_v22  ;;  %v392_v49 = vmul.f32 0.9993338, %v748_v31 }
 0x1dd   :  { %v344_v55 = vsel %vm342_vm15, %v343_v53, %v761_v51  ;;  %v666_v53 = vmov -1e+30  }
 0x1de   :  { %v345_v56 = vadd.s32 %v344_v55, %v340_v54  ;;  %v281_v32 = vmul.f32 2.0, %v280_v27  ;;  %68 = vst.msk [vmem:[#allocation3] sm:$0xff] %vm66_vm0, %v666_v53  ;;  %71 = vst.msk [vmem:[#allocation6] sm:$0xff] %vm66_vm0, %v666_v53 }
 0x1e0   :  { %v346_v57 = vadd.s32 536870912, %v345_v56  ;;  %v282_v34 = vsub.f32 %v278_v16, %v281_v32 }
 0x1e2   :  { %v347_v58 = vshrl.u32 %v346_v57, 30  ;;  %v283_v38 = vmul.f32 2.0, %v282_v34 }
 0x1e4   :  { %v348_v60 = vshll.u32 %v347_v58, 30  ;;  %v371_v26 = vsub.s32 4, %v347_v58  ;;  %v284_v42 = vsub.f32 1.0, %v283_v38 }
 0x1e5   :  { %v784_v57 = vld [vmem:[#allocation6] sm:$0xff] }
 0x1e6   :  { %v349_v61 = vsub.s32 %v345_v56, %v348_v60  ;;  %v372_v30 = vsel %vm287_vm2, %v371_v26, %v347_v58  ;;  %v406_v58 = vld [vmem:[#allocation3] sm:$0xff] }
 0x1e7   :  { %v374_v33 = vsel %vm286_vm3, 0, %v372_v30 }
 0x1e8   :  { %v351_v62 = vsub.s32 0, %v349_v61  ;;  %v378_v35 = vand.u32 3, %v374_v33 }
 0x1ea   :  { %v517_v63 = vmin.u32 %v351_v62, %v349_v61  ;;  %vm383_vm4 = vcmp.eq.s32.totalorder %v378_v35, 2  ;;  %vm380_vm5 = vcmp.eq.s32.totalorder %v378_v35, 0  ;;  %vm379_vm6 = vcmp.lt.s32.totalorder %v378_v35, 2 }
 0x1ec   :  { %v353_v2 = vclz %v517_v63 }
 0x1ee   :  { %v518_v3 = vadd.s32 4294967294, %v353_v2 }
 0x1f0   :  { %vm519_vm1 = vcmp.lt.s32.totalorder %v518_v3, 0 }
 0x1f1   :  { %v356_v4 = vsel %vm519_vm1, 0, %v518_v3 }
 0x1f2   :  { %v357_v6 = vsub.s32 32, %v356_v4  ;;  %v361_v7 = vsub.s32 4294967266, %v356_v4  ;;  %v358_v8 = vshll.u32 %v349_v61, %v356_v4 }
 0x1f4   :  { %v359_v9 = vshrl.u32 %v341_v5, %v357_v6  ;;  %v362_v10 = vadd.s32 127, %v361_v7 }
 0x1f6   :  { %v360_v12 = vor.u32 %v359_v9, %v358_v8  ;;  %v363_v14 = vshll.u32 %v362_v10, 23 }
 0x1f8   :  { %v364_v15 = vor.u32 4788187, %v363_v14  ;;  %v367_v18 = vcvt.s32.f32 %v360_v12 }
 0x1fa   :  { %v365_v17 = vand.u32 2147483647, %v364_v15 }
 0x1fc   :  { %v368_v20 = vmul.f32 %v367_v18, %v365_v17 }
 0x1fe   :  { %v369_v24 = vxor.u32 2147483648, %v368_v20 }
 0x200   :  { %v370_v25 = vsel %vm287_vm2, %v369_v24, %v368_v20 }
 0x201   :  { %v373_v29 = vsel %vm286_vm3, %v751_v59, %v370_v25 }
 0x202   :  { %596 = vcosq.f32 %v373_v29 }
 0x203   :  { %598 = vsinq.f32 %v373_v29 }
 0x20c   :  { %v597_v36 = vpop.eup %596 }
 0x20d   :  { %v599_v37 = vpop.eup %598  ;;  %v384_v39 = vxor.u32 2147483648, %v597_v36 }
 0x20e   :  { %v381_v40 = vxor.u32 2147483648, %v599_v37 }
 0x20f   :  { %v385_v1 = vsel %vm383_vm4, %v384_v39, %v599_v37 }
 0x210   :  { %v382_v41 = vsel %vm380_vm5, %v597_v36, %v381_v40 }
 0x211   :  { %v386_v43 = vsel %vm379_vm6, %v382_v41, %v385_v1 }
 0x212   :  { %v387_v44 = vsel %vm377_vm7, nan, %v386_v43 }
 0x213   :  { %v388_v45 = vmul.f32 %v387_v44, %v284_v42 }
 0x215   :  { %v390_v47 = vsub.f32 %v388_v45, %v389_v46 }
 0x217   :  { %v391_v48 = vmul.f32 %v390_v47, %v745_v28  ;;  %v404_v28 = vsel %vm403_vm8, 0.0, %v666_v53 }
 0x219   :  { %v393_v50 = vmul.f32 0.00066622254, %v391_v48 }
 0x21b   :  { %v775_v51 = vadd.f32 %v393_v50, %v392_v49 }
 0x21d   :  { %v395_v52 = vsub.f32 %v775_v51, %v748_v31 }
 0x21f   :  { %398 = vperm.xlu1 %569, %v395_v52  }
 0x29e   :  { %v399_v59 = vpop.permute.xlu1 %398 }
 0x29f   :  { %v401_v54 = vmul.f32 %v738_v21, %v399_v59 }
 0x2a1   :  { %v402_v55 = vadd.f32 %v401_v54, %v740_v23 }
 0x2a3   :  { %v405_v56 = vadd.f32 %v404_v28, %v402_v55 }
 0x2a5   :  { %407 = vmax.xlane.f32.xlu1 %v405_v56 }
 0x332   :  { %v408_v31 = vpop.xlane.xlu1 %407 }
 0x333   :  { %vm450_vm9 = vcmp.gt.f32.partialorder %v408_v31, %v784_v57  ;;  %v409_v60 = vmax.f32 %v406_v58, %v408_v31  ;;  %vm433_vm10 = vcmp.eq.f32.partialorder %v405_v56, %v408_v31 }
 0x334   :  { %v455_v61 = vsel %vm450_vm9, %v408_v31, %v784_v57  ;;  %v434_v23 = vsel %vm433_vm10, %v734_v19, 1073741824 }
 0x335   :  { %456 = vst.msk [vmem:[#allocation6] sm:$0xff] %vm66_vm0, %v455_v61  ;;  %417 = vperm.xlu0 %568, %v409_v60   ;;  %v410_v62 = vsub.f32 %v406_v58, %v409_v60  ;;  %428 = vst.msk [vmem:[#allocation3] sm:$0xff] %vm66_vm0, %v409_v60  ;;  %v436_v63 = vshra.s32 %v434_v23, 16  ;;  %v435_v7 = vand.u32 65535, %v434_v23 }
 0x337   :  { %v438_v2 = vcvt.s32.f32 %v436_v63  ;;  %v437_v9 = vcvt.s32.f32 %v435_v7 }
 0x354   :  { %439 = vmin.xlane.f32.xlu0 %v438_v2 }
 0x3b4   :  { %v418_v3 = vpop.permute.xlu0 %417 }
 0x3b5   :  { %v420_v4 = vsub.f32 %v405_v56, %v418_v3 }
 0x3b7   :  { %v421_v5 = vmul.f32 1.442695, %v420_v4 }
 0x3b9   :  { %600 = vpow2.f32 %v421_v5 }
 0x3c3   :  { %v601_v6 = vpop.eup %600 }
 0x3c4   :  { %423 = vadd.xlane.f32.xlu1 %v601_v6 }
 0x3e1   :  { %v440_v8 = vpop.xlane.xlu0 %439 }
 0x3e2   :  { %vm441_vm11 = vcmp.eq.f32.partialorder %v438_v2, %v440_v8 }
 0x3e3   :  { %v442_v10 = vsel %vm441_vm11, %v437_v9, inf }
 0x3e4   :  { %443 = vmin.xlane.f32.xlu1 %v442_v10 }
 0x3e8   :  { %237 = vadd.xlane.f32.xlu1 %v738_v21 }
 0x3e9   :  { %639 = shalt.err (!%p636_p12)
}
 0x3ea   :  { %s640_s13 = scalar_lea.hbm %s825_s3, 128 }
 0x3eb   :  { %p641_p13 = scmp.ne.s32.totalorder %s825_s3, %s640_s13  ;;  %p644_p0 = scmp.lt.u32.totalorder %s640_s13, %s825_s3 }
 0x3ed   :  { %p646_p1 = pnand %p644_p0, %p641_p13 }
 0x3ef   :  { %649 = shalt.err (!%p646_p1)
}
 0x3f0   :  { %492 = dma.vmem_to_hbm [thread:$0]  %s490_s9, 128, %s825_s3, [#allocation10]   ;;  %v411_v19 = vmul.f32 1.442695, %v410_v62  ;;  %v413_v11 = vld [vmem:[#allocation4] sm:$0xff]  ;;  %v446_v17 = vcvt.f32.s32 %v440_v8  ;;  %v451_v24 = vld [vmem:[#allocation7] sm:$0xff] }
 0x3f1   :  { %v429_v26 = vld [vmem:[#allocation5] sm:$0xff]  ;;  %v471_v36 = vld [vmem:[#allocation3] sm:$0xff] }
 0x3f2   :  { %602 = vpow2.f32 %v411_v19  ;;  %v447_v20 = vshll.u32 %v446_v17, 16 }
 0x3fc   :  { %v603_v21 = vpop.eup %602 }
 0x3fd   :  { %v414_v12 = vmul.f32 %v603_v21, %v413_v11 }
 0x451   :  { %v424_v14 = vpop.xlane.xlu1 %423 }
 0x452   :  { %v425_v15 = vadd.f32 %v424_v14, %v414_v12 }
 0x454   :  { %427 = vst.msk [vmem:[#allocation4] sm:$0xff] %vm66_vm0, %v425_v15 }
 0x45b   :  { %v468_v16 = vld [vmem:[#allocation4] sm:$0xff] }
 0x45c   :  { %604 = vlog2.f32 %v468_v16 }
 0x466   :  { %v605_v33 = vpop.eup %604 }
 0x467   :  { %v470_v34 = vmul.f32 0.6931472, %v605_v33 }
 0x469   :  { %v472_v38 = vadd.f32 %v471_v36, %v470_v34 }
 0x471   :  { %v444_v18 = vpop.xlane.xlu1 %443 }
 0x472   :  { %v445_v22 = vcvt.f32.s32 %v444_v18 }
 0x474   :  { %v448_v25 = vadd.s32 %v447_v20, %v445_v22 }
 0x475   :  { %v238_v27 = vpop.xlane.xlu1 %237 }
 0x476   :  { %v452_v29 = vsel %vm450_vm9, %v448_v25, %v451_v24  ;;  %v430_v30 = vmul.f32 %v775_v51, %v238_v27 }
 0x477   :  { %453 = vst.msk [vmem:[#allocation7] sm:$0xff] %vm66_vm0, %v452_v29 }
 0x478   :  { %v431_v32 = vadd.f32 %v430_v30, %v429_v26 }
 0x47a   :  { %432 = vst.msk [vmem:[#allocation5] sm:$0xff] %vm66_vm0, %v431_v32 }
 0x47e   :  { %v477_v35 = vld [vmem:[#allocation7] sm:$0xff] }
 0x47f   :  { %vm478_vm12 = vcmp.eq.s32.totalorder %v477_v35, %v720_v13 }
 0x480   :  { %v520_v37 = vsel %vm478_vm12, 1.0, %v657_v0 }
 0x481   :  { %482 = vst.msk [vmem:[%s827_s5] sm:$0xff] %vm66_vm0, %v520_v37  ;;  %v473_v39 = vld [vmem:[#allocation5] sm:$0xff] }
 0x482   :  { %v474_v40 = vsub.f32 %v472_v38, %v473_v39 }
 0x484   :  { %476 = vst.msk [vmem:[%s826_s4] sm:$0xff] %vm66_vm0, %v474_v40 }
 0x485   :  { %652 = dma.done.wait [#allocation10], 128  }
 0x486   :  { %653 = vsyncadd [#allocation10], 4294967168 }
 0x487   :  { %504 = vsyncpa [#allocation9], 1 }
 0x488   :  { %505 = vsyncpa [#allocation10], 1 }

</bundles_post_ra>
